<compile_context>
chip_gen: v7x
topology: tpu7x:2x2x1
jax: 0.10.0
libtpu: 0.0.40
codegen_flags: <defaults>
</compile_context>

<pallas_src>
import math

import jax
import jax.numpy as jnp
import numpy as np
from jax.experimental import pallas as pl
from jax.experimental.pallas import tpu as pltpu


# ---------------------------------------------------------------------------
# DCT filter construction (deterministic, mirrors get_dct_filter / build_filter)
# ---------------------------------------------------------------------------
def _build_filter(pos, freq, POS):
    result = math.cos(math.pi * freq * (pos + 0.5) / POS) / math.sqrt(POS)
    if freq == 0:
        return result
    return result * math.sqrt(2)


def get_dct_filter(tile_size_x, tile_size_y, mapper_x, mapper_y, channel):
    assert len(mapper_x) == len(mapper_y)
    assert channel % len(mapper_x) == 0
    dct_filter = np.zeros((channel, tile_size_x, tile_size_y), dtype=np.float32)
    c_part = channel // len(mapper_x)
    for i, (u_x, v_y) in enumerate(zip(mapper_x, mapper_y)):
        for t_x in range(tile_size_x):
            for t_y in range(tile_size_y):
                dct_filter[i * c_part:(i + 1) * c_part, t_x, t_y] = (
                    _build_filter(t_x, u_x, tile_size_x)
                    * _build_filter(t_y, v_y, tile_size_y)
                )
    return jnp.asarray(dct_filter)


# ---------------------------------------------------------------------------
# Batch-block size selection
# ---------------------------------------------------------------------------
def _choose_batch_block(n, c, hw, dtype_bytes=4, max_unroll=8,
                        x_block_budget_bytes=8 * 1024 * 1024):
    """Pick TB (batch elements per grid step) dividing N.

    Keeps the (double-buffered) x block within a VMEM budget, bounds the static
    unroll, and keeps >= 2 grid steps when N >= 2 so the "parallel" grid axis
    can be sharded across v7x's two TensorCores.
    """
    per_batch = max(1, c * hw * dtype_bytes)
    cap = max(1, min(max_unroll, x_block_budget_bytes // (2 * per_batch)))
    if n >= 2:
        cap = min(cap, n // 2)
    cap = max(1, min(cap, n))
    tb = 1
    for d in range(1, cap + 1):
        if n % d == 0:
            tb = d
    return tb


# ---------------------------------------------------------------------------
# Pallas kernel factory
# ---------------------------------------------------------------------------
def _make_dct_kernel(TB, C, H, W):
    HW = H * W

    def kernel(x_ref, w_ref, res_ref, resh_ref, resw_ref):
        # x_ref   : (TB, C, HW)  -- H*W flattened onto the lane axis (lane-dense)
        # w_ref   : (C, HW)      -- DCT filter, resident in VMEM (constant index_map)
        # res_ref : (TB, C, 1)   -- global sum (trailing 1 kept kernel-side; tiny)
        # resh_ref: (TB, C, H)   -- sum over W
        # resw_ref: (TB, C, W)   -- sum over H
        w = w_ref[...].astype(jnp.float32)
        # One block-wide elementwise multiply, accumulated in f32.
        xw_all = x_ref[...].astype(jnp.float32) * w[None]            # (TB, C, HW)
        # One-hot lane index used to place per-segment sums into lanes 0..H-1.
        # Hoisted out of the loops (broadcast_in_dim is not CSE'd by JAX).
        lane_h = jax.lax.broadcasted_iota(jnp.int32, (C, H), 1)

        # TB is a small static constant -> fully unrolled.
        for b in range(TB):
            xw = xw_all[b]                                            # (C, HW)
            # The H contiguous W-wide lane segments of the flattened row.
            segs = [xw[:, h * W:(h + 1) * W] for h in range(H)]       # H x (C, W)

            # result_w: sum over H  == elementwise sum of the segments (exact f32).
            acc_w = segs[0]
            for h in range(1, H):
                acc_w = acc_w + segs[h]                               # (C, W)

            # result_h: per-segment lane sums, scattered into lanes 0..H-1.
            resh_val = jnp.zeros((C, H), dtype=jnp.float32)
            for h in range(H):
                col = jnp.sum(segs[h], axis=-1, keepdims=True)        # (C, 1)
                resh_val = resh_val + jnp.where(lane_h == h, col, 0.0)

            # result: global (H, W) sum, reusing the W-reduced partial.
            res_val = jnp.sum(acc_w, axis=-1, keepdims=True)          # (C, 1)

            resh_ref[b] = resh_val.astype(resh_ref.dtype)
            resw_ref[b] = acc_w.astype(resw_ref.dtype)
            res_ref[b] = res_val.astype(res_ref.dtype)

    return kernel


# ---------------------------------------------------------------------------
# Wrapper
# ---------------------------------------------------------------------------
def multispectral_dct_layer(x, weight):
    """Pallas implementation of MultiSpectralDCTLayer.forward.

    Args:
      x:      (N, C, H, W)
      weight: (C, H, W)
    Returns:
      (result (N, C), result_h (N, C, H, 1), result_w (N, C, 1, W))
    """
    assert x.ndim == 4, f"x must be 4 dimensions, but got {x.ndim}"
    N, C, H, W = x.shape
    assert weight.shape == (C, H, W)
    HW = H * W

    # Lane-dense views (free reshapes: trailing dims are contiguous).
    x3 = x.reshape(N, C, HW)
    w2 = weight.reshape(C, HW)

    TB = _choose_batch_block(N, C, HW, dtype_bytes=x.dtype.itemsize)
    grid = (N // TB,)

    out_shapes = (
        jax.ShapeDtypeStruct((N, C, 1), x.dtype),  # result   (squeezed in wrapper)
        jax.ShapeDtypeStruct((N, C, H), x.dtype),  # result_h (expanded in wrapper)
        jax.ShapeDtypeStruct((N, C, W), x.dtype),  # result_w (expanded in wrapper)
    )

    grid_spec = pltpu.PrefetchScalarGridSpec(
        num_scalar_prefetch=0,
        grid=grid,
        in_specs=[
            pl.BlockSpec((TB, C, HW), lambda n: (n, 0, 0)),   # x: TB batch rows / step
            pl.BlockSpec((C, HW), lambda n: (0, 0)),          # weight: resident
        ],
        out_specs=[
            pl.BlockSpec((TB, C, 1), lambda n: (n, 0, 0)),
            pl.BlockSpec((TB, C, H), lambda n: (n, 0, 0)),
            pl.BlockSpec((TB, C, W), lambda n: (n, 0, 0)),
        ],
    )

    res, resh, resw = pl.pallas_call(
        _make_dct_kernel(TB, C, H, W),
        out_shape=out_shapes,
        grid_spec=grid_spec,
        compiler_params=pltpu.CompilerParams(
            dimension_semantics=("parallel",),
            vmem_limit_bytes=48 * 1024 * 1024,
        ),
    )(x3, w2)

    # Glue to match the PyTorch module's output shapes (free reshapes).
    result = res.reshape(N, C)
    result_h = resh.reshape(N, C, H, 1)
    result_w = resw.reshape(N, C, 1, W)
    return result, result_h, result_w


# ---------------------------------------------------------------------------
# Pure-JAX reference for verification
# ---------------------------------------------------------------------------
def _reference(x, weight):
    xw = x.astype(jnp.float32) * weight[None].astype(jnp.float32)
    result = jnp.sum(xw, axis=(2, 3))
    result_h = jnp.sum(xw, axis=3)[..., None]
    result_w = jnp.sum(xw, axis=2)[:, :, None, :]
    return result.astype(x.dtype), result_h.astype(x.dtype), result_w.astype(x.dtype)


if __name__ == "__main__":
    # Small shapes consistent with the module: N=2, C=4, H=W=16.
    N, C, H, W = 2, 4, 16, 16
    mapper_x = [0, 0, 1, 1]
    mapper_y = [0, 1, 0, 1]
    assert C % len(mapper_x) == 0

    weight = get_dct_filter(H, W, mapper_x, mapper_y, C)

    key = jax.random.PRNGKey(0)
    x = jax.random.normal(key, (N, C, H, W), dtype=jnp.float32)

    result, result_h, result_w = multispectral_dct_layer(x, weight)
    jax.block_until_ready((result, result_h, result_w))

    ref_r, ref_h, ref_w = _reference(x, weight)
    np.testing.assert_allclose(np.asarray(result), np.asarray(ref_r), rtol=1e-5, atol=1e-5)
    np.testing.assert_allclose(np.asarray(result_h), np.asarray(ref_h), rtol=1e-5, atol=1e-5)
    np.testing.assert_allclose(np.asarray(result_w), np.asarray(ref_w), rtol=1e-5, atol=1e-5)

    assert result.shape == (N, C)
    assert result_h.shape == (N, C, H, 1)
    assert result_w.shape == (N, C, 1, W)

    print("KERNEL_OK")
</pallas_src>

<mosaic_0001>
module attributes {stable_mosaic.version = 11 : i64} {
  func.func @kernel(%arg0: i32, %arg1: memref<1x4x256xf32, #tpu.memory_space<vmem>>, %arg2: memref<4x256xf32, #tpu.memory_space<vmem>>, %arg3: memref<1x4x1xf32, #tpu.memory_space<vmem>>, %arg4: memref<1x4x16xf32, #tpu.memory_space<vmem>>, %arg5: memref<1x4x16xf32, #tpu.memory_space<vmem>>) attributes {dimension_semantics = [#tpu.dimension_semantics<parallel>], iteration_bounds = array<i64: 2>, scalar_prefetch = 0 : i64, scratch_operands = 0 : i64, tpu.core_type = #tpu.core_type<tc>, window_params = [{transform_indices = @transform_0, window_bounds = array<i64: 1, 4, 256>}, {pipeline_mode = #tpu.pipeline_mode<synchronous>, transform_indices = @transform_1, window_bounds = array<i64: 4, 256>}, {transform_indices = @transform_2, window_bounds = array<i64: 1, 4, 1>}, {transform_indices = @transform_3, window_bounds = array<i64: 1, 4, 16>}, {transform_indices = @transform_4, window_bounds = array<i64: 1, 4, 16>}]} {
    %c0 = arith.constant 0 : index
    %c0_0 = arith.constant 0 : index
    %0 = vector.load %arg2[%c0, %c0_0] : memref<4x256xf32, #tpu.memory_space<vmem>>, vector<4x256xf32>
    %c0_1 = arith.constant 0 : index
    %c0_2 = arith.constant 0 : index
    %c0_3 = arith.constant 0 : index
    %1 = vector.load %arg1[%c0_1, %c0_2, %c0_3] : memref<1x4x256xf32, #tpu.memory_space<vmem>>, vector<1x4x256xf32>
    %2 = vector.shape_cast %0 : vector<4x256xf32> to vector<1x4x256xf32>
    %3 = arith.mulf %1, %2 : vector<1x4x256xf32>
    %4 = tpu.iota {dimensions = array<i32: 1>} : vector<4x16xi32>
    %5 = vector.shape_cast %3 : vector<1x4x256xf32> to vector<4x256xf32>
    %6 = vector.extract_strided_slice %5 {offsets = [0, 0], sizes = [4, 16], strides = [1, 1]} : vector<4x256xf32> to vector<4x16xf32>
    %7 = vector.extract_strided_slice %5 {offsets = [0, 16], sizes = [4, 16], strides = [1, 1]} : vector<4x256xf32> to vector<4x16xf32>
    %8 = vector.extract_strided_slice %5 {offsets = [0, 32], sizes = [4, 16], strides = [1, 1]} : vector<4x256xf32> to vector<4x16xf32>
    %9 = vector.extract_strided_slice %5 {offsets = [0, 48], sizes = [4, 16], strides = [1, 1]} : vector<4x256xf32> to vector<4x16xf32>
    %10 = vector.extract_strided_slice %5 {offsets = [0, 64], sizes = [4, 16], strides = [1, 1]} : vector<4x256xf32> to vector<4x16xf32>
    %11 = vector.extract_strided_slice %5 {offsets = [0, 80], sizes = [4, 16], strides = [1, 1]} : vector<4x256xf32> to vector<4x16xf32>
    %12 = vector.extract_strided_slice %5 {offsets = [0, 96], sizes = [4, 16], strides = [1, 1]} : vector<4x256xf32> to vector<4x16xf32>
    %13 = vector.extract_strided_slice %5 {offsets = [0, 112], sizes = [4, 16], strides = [1, 1]} : vector<4x256xf32> to vector<4x16xf32>
    %14 = vector.extract_strided_slice %5 {offsets = [0, 128], sizes = [4, 16], strides = [1, 1]} : vector<4x256xf32> to vector<4x16xf32>
    %15 = vector.extract_strided_slice %5 {offsets = [0, 144], sizes = [4, 16], strides = [1, 1]} : vector<4x256xf32> to vector<4x16xf32>
    %16 = vector.extract_strided_slice %5 {offsets = [0, 160], sizes = [4, 16], strides = [1, 1]} : vector<4x256xf32> to vector<4x16xf32>
    %17 = vector.extract_strided_slice %5 {offsets = [0, 176], sizes = [4, 16], strides = [1, 1]} : vector<4x256xf32> to vector<4x16xf32>
    %18 = vector.extract_strided_slice %5 {offsets = [0, 192], sizes = [4, 16], strides = [1, 1]} : vector<4x256xf32> to vector<4x16xf32>
    %19 = vector.extract_strided_slice %5 {offsets = [0, 208], sizes = [4, 16], strides = [1, 1]} : vector<4x256xf32> to vector<4x16xf32>
    %20 = vector.extract_strided_slice %5 {offsets = [0, 224], sizes = [4, 16], strides = [1, 1]} : vector<4x256xf32> to vector<4x16xf32>
    %21 = vector.extract_strided_slice %5 {offsets = [0, 240], sizes = [4, 16], strides = [1, 1]} : vector<4x256xf32> to vector<4x16xf32>
    %22 = arith.addf %6, %7 : vector<4x16xf32>
    %23 = arith.addf %22, %8 : vector<4x16xf32>
    %24 = arith.addf %23, %9 : vector<4x16xf32>
    %25 = arith.addf %24, %10 : vector<4x16xf32>
    %26 = arith.addf %25, %11 : vector<4x16xf32>
    %27 = arith.addf %26, %12 : vector<4x16xf32>
    %28 = arith.addf %27, %13 : vector<4x16xf32>
    %29 = arith.addf %28, %14 : vector<4x16xf32>
    %30 = arith.addf %29, %15 : vector<4x16xf32>
    %31 = arith.addf %30, %16 : vector<4x16xf32>
    %32 = arith.addf %31, %17 : vector<4x16xf32>
    %33 = arith.addf %32, %18 : vector<4x16xf32>
    %34 = arith.addf %33, %19 : vector<4x16xf32>
    %35 = arith.addf %34, %20 : vector<4x16xf32>
    %36 = arith.addf %35, %21 : vector<4x16xf32>
    %cst = arith.constant 0.000000e+00 : f32
    %37 = vector.broadcast %cst : f32 to vector<4x16xf32>
    %cst_4 = arith.constant dense<0.000000e+00> : vector<4xf32>
    %38 = vector.multi_reduction <add>, %6, %cst_4 [1] : vector<4x16xf32> to vector<4xf32>
    %39 = vector.shape_cast %38 : vector<4xf32> to vector<4x1xf32>
    %c0_i32 = arith.constant 0 : i32
    %40 = vector.broadcast %c0_i32 : i32 to vector<4x16xi32>
    %41 = arith.cmpi eq, %4, %40 : vector<4x16xi32>
    %cst_5 = arith.constant 0.000000e+00 : f32
    %42 = vector.shape_cast %39 : vector<4x1xf32> to vector<4x1xf32>
    %43 = vector.broadcast %42 : vector<4x1xf32> to vector<4x16xf32>
    %44 = vector.broadcast %cst_5 : f32 to vector<4x16xf32>
    %45 = arith.select %41, %43, %44 : vector<4x16xi1>, vector<4x16xf32>
    %46 = arith.addf %37, %45 : vector<4x16xf32>
    %cst_6 = arith.constant dense<0.000000e+00> : vector<4xf32>
    %47 = vector.multi_reduction <add>, %7, %cst_6 [1] : vector<4x16xf32> to vector<4xf32>
    %48 = vector.shape_cast %47 : vector<4xf32> to vector<4x1xf32>
    %c1_i32 = arith.constant 1 : i32
    %49 = vector.broadcast %c1_i32 : i32 to vector<4x16xi32>
    %50 = arith.cmpi eq, %4, %49 : vector<4x16xi32>
    %cst_7 = arith.constant 0.000000e+00 : f32
    %51 = vector.shape_cast %48 : vector<4x1xf32> to vector<4x1xf32>
    %52 = vector.broadcast %51 : vector<4x1xf32> to vector<4x16xf32>
    %53 = vector.broadcast %cst_7 : f32 to vector<4x16xf32>
    %54 = arith.select %50, %52, %53 : vector<4x16xi1>, vector<4x16xf32>
    %55 = arith.addf %46, %54 : vector<4x16xf32>
    %cst_8 = arith.constant dense<0.000000e+00> : vector<4xf32>
    %56 = vector.multi_reduction <add>, %8, %cst_8 [1] : vector<4x16xf32> to vector<4xf32>
    %57 = vector.shape_cast %56 : vector<4xf32> to vector<4x1xf32>
    %c2_i32 = arith.constant 2 : i32
    %58 = vector.broadcast %c2_i32 : i32 to vector<4x16xi32>
    %59 = arith.cmpi eq, %4, %58 : vector<4x16xi32>
    %cst_9 = arith.constant 0.000000e+00 : f32
    %60 = vector.shape_cast %57 : vector<4x1xf32> to vector<4x1xf32>
    %61 = vector.broadcast %60 : vector<4x1xf32> to vector<4x16xf32>
    %62 = vector.broadcast %cst_9 : f32 to vector<4x16xf32>
    %63 = arith.select %59, %61, %62 : vector<4x16xi1>, vector<4x16xf32>
    %64 = arith.addf %55, %63 : vector<4x16xf32>
    %cst_10 = arith.constant dense<0.000000e+00> : vector<4xf32>
    %65 = vector.multi_reduction <add>, %9, %cst_10 [1] : vector<4x16xf32> to vector<4xf32>
    %66 = vector.shape_cast %65 : vector<4xf32> to vector<4x1xf32>
    %c3_i32 = arith.constant 3 : i32
    %67 = vector.broadcast %c3_i32 : i32 to vector<4x16xi32>
    %68 = arith.cmpi eq, %4, %67 : vector<4x16xi32>
    %cst_11 = arith.constant 0.000000e+00 : f32
    %69 = vector.shape_cast %66 : vector<4x1xf32> to vector<4x1xf32>
    %70 = vector.broadcast %69 : vector<4x1xf32> to vector<4x16xf32>
    %71 = vector.broadcast %cst_11 : f32 to vector<4x16xf32>
    %72 = arith.select %68, %70, %71 : vector<4x16xi1>, vector<4x16xf32>
    %73 = arith.addf %64, %72 : vector<4x16xf32>
    %cst_12 = arith.constant dense<0.000000e+00> : vector<4xf32>
    %74 = vector.multi_reduction <add>, %10, %cst_12 [1] : vector<4x16xf32> to vector<4xf32>
    %75 = vector.shape_cast %74 : vector<4xf32> to vector<4x1xf32>
    %c4_i32 = arith.constant 4 : i32
    %76 = vector.broadcast %c4_i32 : i32 to vector<4x16xi32>
    %77 = arith.cmpi eq, %4, %76 : vector<4x16xi32>
    %cst_13 = arith.constant 0.000000e+00 : f32
    %78 = vector.shape_cast %75 : vector<4x1xf32> to vector<4x1xf32>
    %79 = vector.broadcast %78 : vector<4x1xf32> to vector<4x16xf32>
    %80 = vector.broadcast %cst_13 : f32 to vector<4x16xf32>
    %81 = arith.select %77, %79, %80 : vector<4x16xi1>, vector<4x16xf32>
    %82 = arith.addf %73, %81 : vector<4x16xf32>
    %cst_14 = arith.constant dense<0.000000e+00> : vector<4xf32>
    %83 = vector.multi_reduction <add>, %11, %cst_14 [1] : vector<4x16xf32> to vector<4xf32>
    %84 = vector.shape_cast %83 : vector<4xf32> to vector<4x1xf32>
    %c5_i32 = arith.constant 5 : i32
    %85 = vector.broadcast %c5_i32 : i32 to vector<4x16xi32>
    %86 = arith.cmpi eq, %4, %85 : vector<4x16xi32>
    %cst_15 = arith.constant 0.000000e+00 : f32
    %87 = vector.shape_cast %84 : vector<4x1xf32> to vector<4x1xf32>
    %88 = vector.broadcast %87 : vector<4x1xf32> to vector<4x16xf32>
    %89 = vector.broadcast %cst_15 : f32 to vector<4x16xf32>
    %90 = arith.select %86, %88, %89 : vector<4x16xi1>, vector<4x16xf32>
    %91 = arith.addf %82, %90 : vector<4x16xf32>
    %cst_16 = arith.constant dense<0.000000e+00> : vector<4xf32>
    %92 = vector.multi_reduction <add>, %12, %cst_16 [1] : vector<4x16xf32> to vector<4xf32>
    %93 = vector.shape_cast %92 : vector<4xf32> to vector<4x1xf32>
    %c6_i32 = arith.constant 6 : i32
    %94 = vector.broadcast %c6_i32 : i32 to vector<4x16xi32>
    %95 = arith.cmpi eq, %4, %94 : vector<4x16xi32>
    %cst_17 = arith.constant 0.000000e+00 : f32
    %96 = vector.shape_cast %93 : vector<4x1xf32> to vector<4x1xf32>
    %97 = vector.broadcast %96 : vector<4x1xf32> to vector<4x16xf32>
    %98 = vector.broadcast %cst_17 : f32 to vector<4x16xf32>
    %99 = arith.select %95, %97, %98 : vector<4x16xi1>, vector<4x16xf32>
    %100 = arith.addf %91, %99 : vector<4x16xf32>
    %cst_18 = arith.constant dense<0.000000e+00> : vector<4xf32>
    %101 = vector.multi_reduction <add>, %13, %cst_18 [1] : vector<4x16xf32> to vector<4xf32>
    %102 = vector.shape_cast %101 : vector<4xf32> to vector<4x1xf32>
    %c7_i32 = arith.constant 7 : i32
    %103 = vector.broadcast %c7_i32 : i32 to vector<4x16xi32>
    %104 = arith.cmpi eq, %4, %103 : vector<4x16xi32>
    %cst_19 = arith.constant 0.000000e+00 : f32
    %105 = vector.shape_cast %102 : vector<4x1xf32> to vector<4x1xf32>
    %106 = vector.broadcast %105 : vector<4x1xf32> to vector<4x16xf32>
    %107 = vector.broadcast %cst_19 : f32 to vector<4x16xf32>
    %108 = arith.select %104, %106, %107 : vector<4x16xi1>, vector<4x16xf32>
    %109 = arith.addf %100, %108 : vector<4x16xf32>
    %cst_20 = arith.constant dense<0.000000e+00> : vector<4xf32>
    %110 = vector.multi_reduction <add>, %14, %cst_20 [1] : vector<4x16xf32> to vector<4xf32>
    %111 = vector.shape_cast %110 : vector<4xf32> to vector<4x1xf32>
    %c8_i32 = arith.constant 8 : i32
    %112 = vector.broadcast %c8_i32 : i32 to vector<4x16xi32>
    %113 = arith.cmpi eq, %4, %112 : vector<4x16xi32>
    %cst_21 = arith.constant 0.000000e+00 : f32
    %114 = vector.shape_cast %111 : vector<4x1xf32> to vector<4x1xf32>
    %115 = vector.broadcast %114 : vector<4x1xf32> to vector<4x16xf32>
    %116 = vector.broadcast %cst_21 : f32 to vector<4x16xf32>
    %117 = arith.select %113, %115, %116 : vector<4x16xi1>, vector<4x16xf32>
    %118 = arith.addf %109, %117 : vector<4x16xf32>
    %cst_22 = arith.constant dense<0.000000e+00> : vector<4xf32>
    %119 = vector.multi_reduction <add>, %15, %cst_22 [1] : vector<4x16xf32> to vector<4xf32>
    %120 = vector.shape_cast %119 : vector<4xf32> to vector<4x1xf32>
    %c9_i32 = arith.constant 9 : i32
    %121 = vector.broadcast %c9_i32 : i32 to vector<4x16xi32>
    %122 = arith.cmpi eq, %4, %121 : vector<4x16xi32>
    %cst_23 = arith.constant 0.000000e+00 : f32
    %123 = vector.shape_cast %120 : vector<4x1xf32> to vector<4x1xf32>
    %124 = vector.broadcast %123 : vector<4x1xf32> to vector<4x16xf32>
    %125 = vector.broadcast %cst_23 : f32 to vector<4x16xf32>
    %126 = arith.select %122, %124, %125 : vector<4x16xi1>, vector<4x16xf32>
    %127 = arith.addf %118, %126 : vector<4x16xf32>
    %cst_24 = arith.constant dense<0.000000e+00> : vector<4xf32>
    %128 = vector.multi_reduction <add>, %16, %cst_24 [1] : vector<4x16xf32> to vector<4xf32>
    %129 = vector.shape_cast %128 : vector<4xf32> to vector<4x1xf32>
    %c10_i32 = arith.constant 10 : i32
    %130 = vector.broadcast %c10_i32 : i32 to vector<4x16xi32>
    %131 = arith.cmpi eq, %4, %130 : vector<4x16xi32>
    %cst_25 = arith.constant 0.000000e+00 : f32
    %132 = vector.shape_cast %129 : vector<4x1xf32> to vector<4x1xf32>
    %133 = vector.broadcast %132 : vector<4x1xf32> to vector<4x16xf32>
    %134 = vector.broadcast %cst_25 : f32 to vector<4x16xf32>
    %135 = arith.select %131, %133, %134 : vector<4x16xi1>, vector<4x16xf32>
    %136 = arith.addf %127, %135 : vector<4x16xf32>
    %cst_26 = arith.constant dense<0.000000e+00> : vector<4xf32>
    %137 = vector.multi_reduction <add>, %17, %cst_26 [1] : vector<4x16xf32> to vector<4xf32>
    %138 = vector.shape_cast %137 : vector<4xf32> to vector<4x1xf32>
    %c11_i32 = arith.constant 11 : i32
    %139 = vector.broadcast %c11_i32 : i32 to vector<4x16xi32>
    %140 = arith.cmpi eq, %4, %139 : vector<4x16xi32>
    %cst_27 = arith.constant 0.000000e+00 : f32
    %141 = vector.shape_cast %138 : vector<4x1xf32> to vector<4x1xf32>
    %142 = vector.broadcast %141 : vector<4x1xf32> to vector<4x16xf32>
    %143 = vector.broadcast %cst_27 : f32 to vector<4x16xf32>
    %144 = arith.select %140, %142, %143 : vector<4x16xi1>, vector<4x16xf32>
    %145 = arith.addf %136, %144 : vector<4x16xf32>
    %cst_28 = arith.constant dense<0.000000e+00> : vector<4xf32>
    %146 = vector.multi_reduction <add>, %18, %cst_28 [1] : vector<4x16xf32> to vector<4xf32>
    %147 = vector.shape_cast %146 : vector<4xf32> to vector<4x1xf32>
    %c12_i32 = arith.constant 12 : i32
    %148 = vector.broadcast %c12_i32 : i32 to vector<4x16xi32>
    %149 = arith.cmpi eq, %4, %148 : vector<4x16xi32>
    %cst_29 = arith.constant 0.000000e+00 : f32
    %150 = vector.shape_cast %147 : vector<4x1xf32> to vector<4x1xf32>
    %151 = vector.broadcast %150 : vector<4x1xf32> to vector<4x16xf32>
    %152 = vector.broadcast %cst_29 : f32 to vector<4x16xf32>
    %153 = arith.select %149, %151, %152 : vector<4x16xi1>, vector<4x16xf32>
    %154 = arith.addf %145, %153 : vector<4x16xf32>
    %cst_30 = arith.constant dense<0.000000e+00> : vector<4xf32>
    %155 = vector.multi_reduction <add>, %19, %cst_30 [1] : vector<4x16xf32> to vector<4xf32>
    %156 = vector.shape_cast %155 : vector<4xf32> to vector<4x1xf32>
    %c13_i32 = arith.constant 13 : i32
    %157 = vector.broadcast %c13_i32 : i32 to vector<4x16xi32>
    %158 = arith.cmpi eq, %4, %157 : vector<4x16xi32>
    %cst_31 = arith.constant 0.000000e+00 : f32
    %159 = vector.shape_cast %156 : vector<4x1xf32> to vector<4x1xf32>
    %160 = vector.broadcast %159 : vector<4x1xf32> to vector<4x16xf32>
    %161 = vector.broadcast %cst_31 : f32 to vector<4x16xf32>
    %162 = arith.select %158, %160, %161 : vector<4x16xi1>, vector<4x16xf32>
    %163 = arith.addf %154, %162 : vector<4x16xf32>
    %cst_32 = arith.constant dense<0.000000e+00> : vector<4xf32>
    %164 = vector.multi_reduction <add>, %20, %cst_32 [1] : vector<4x16xf32> to vector<4xf32>
    %165 = vector.shape_cast %164 : vector<4xf32> to vector<4x1xf32>
    %c14_i32 = arith.constant 14 : i32
    %166 = vector.broadcast %c14_i32 : i32 to vector<4x16xi32>
    %167 = arith.cmpi eq, %4, %166 : vector<4x16xi32>
    %cst_33 = arith.constant 0.000000e+00 : f32
    %168 = vector.shape_cast %165 : vector<4x1xf32> to vector<4x1xf32>
    %169 = vector.broadcast %168 : vector<4x1xf32> to vector<4x16xf32>
    %170 = vector.broadcast %cst_33 : f32 to vector<4x16xf32>
    %171 = arith.select %167, %169, %170 : vector<4x16xi1>, vector<4x16xf32>
    %172 = arith.addf %163, %171 : vector<4x16xf32>
    %cst_34 = arith.constant dense<0.000000e+00> : vector<4xf32>
    %173 = vector.multi_reduction <add>, %21, %cst_34 [1] : vector<4x16xf32> to vector<4xf32>
    %174 = vector.shape_cast %173 : vector<4xf32> to vector<4x1xf32>
    %c15_i32 = arith.constant 15 : i32
    %175 = vector.broadcast %c15_i32 : i32 to vector<4x16xi32>
    %176 = arith.cmpi eq, %4, %175 : vector<4x16xi32>
    %cst_35 = arith.constant 0.000000e+00 : f32
    %177 = vector.shape_cast %174 : vector<4x1xf32> to vector<4x1xf32>
    %178 = vector.broadcast %177 : vector<4x1xf32> to vector<4x16xf32>
    %179 = vector.broadcast %cst_35 : f32 to vector<4x16xf32>
    %180 = arith.select %176, %178, %179 : vector<4x16xi1>, vector<4x16xf32>
    %181 = arith.addf %172, %180 : vector<4x16xf32>
    %cst_36 = arith.constant dense<0.000000e+00> : vector<4xf32>
    %182 = vector.multi_reduction <add>, %36, %cst_36 [1] : vector<4x16xf32> to vector<4xf32>
    %183 = vector.shape_cast %182 : vector<4xf32> to vector<4x1xf32>
    %c0_37 = arith.constant 0 : index
    %c0_38 = arith.constant 0 : index
    %c0_39 = arith.constant 0 : index
    %184 = vector.load %arg4[%c0_37, %c0_38, %c0_39] : memref<1x4x16xf32, #tpu.memory_space<vmem>>, vector<1x4x16xf32>
    %185 = vector.shape_cast %184 : vector<1x4x16xf32> to vector<4x16xf32>
    %186 = vector.shape_cast %181 : vector<4x16xf32> to vector<1x4x16xf32>
    tpu.vector_store %arg4[%c0_37, %c0_38, %c0_39], %186 {strides = array<i32>} : memref<1x4x16xf32, #tpu.memory_space<vmem>>, vector<1x4x16xf32>,
    %c0_40 = arith.constant 0 : index
    %c0_41 = arith.constant 0 : index
    %c0_42 = arith.constant 0 : index
    %187 = vector.load %arg5[%c0_40, %c0_41, %c0_42] : memref<1x4x16xf32, #tpu.memory_space<vmem>>, vector<1x4x16xf32>
    %188 = vector.shape_cast %187 : vector<1x4x16xf32> to vector<4x16xf32>
    %189 = vector.shape_cast %36 : vector<4x16xf32> to vector<1x4x16xf32>
    tpu.vector_store %arg5[%c0_40, %c0_41, %c0_42], %189 {strides = array<i32>} : memref<1x4x16xf32, #tpu.memory_space<vmem>>, vector<1x4x16xf32>,
    %c0_43 = arith.constant 0 : index
    %c0_44 = arith.constant 0 : index
    %c0_45 = arith.constant 0 : index
    %190 = vector.load %arg3[%c0_43, %c0_44, %c0_45] : memref<1x4x1xf32, #tpu.memory_space<vmem>>, vector<1x4x1xf32>
    %191 = vector.shape_cast %190 : vector<1x4x1xf32> to vector<4x1xf32>
    %192 = vector.shape_cast %183 : vector<4x1xf32> to vector<1x4x1xf32>
    tpu.vector_store %arg3[%c0_43, %c0_44, %c0_45], %192 {strides = array<i32>} : memref<1x4x1xf32, #tpu.memory_space<vmem>>, vector<1x4x1xf32>,
    return
  }
  func.func @transform_0(%arg0: i32) -> (i32, i32, i32) {
    %c0_i32 = arith.constant 0 : i32
    %c0_i32_0 = arith.constant 0 : i32
    %c0_i32_1 = arith.constant 0 : i32
    return %arg0, %c0_i32, %c0_i32_0 : i32, i32, i32
  }
  func.func @transform_1(%arg0: i32) -> (i32, i32) {
    %c0_i32 = arith.constant 0 : i32
    %c0_i32_0 = arith.constant 0 : i32
    %c0_i32_1 = arith.constant 0 : i32
    return %c0_i32, %c0_i32_0 : i32, i32
  }
  func.func @transform_2(%arg0: i32) -> (i32, i32, i32) {
    %c0_i32 = arith.constant 0 : i32
    %c0_i32_0 = arith.constant 0 : i32
    %c0_i32_1 = arith.constant 0 : i32
    return %arg0, %c0_i32, %c0_i32_0 : i32, i32, i32
  }
  func.func @transform_3(%arg0: i32) -> (i32, i32, i32) {
    %c0_i32 = arith.constant 0 : i32
    %c0_i32_0 = arith.constant 0 : i32
    %c0_i32_1 = arith.constant 0 : i32
    return %arg0, %c0_i32, %c0_i32_0 : i32, i32, i32
  }
  func.func @transform_4(%arg0: i32) -> (i32, i32, i32) {
    %c0_i32 = arith.constant 0 : i32
    %c0_i32_0 = arith.constant 0 : i32
    %c0_i32_1 = arith.constant 0 : i32
    return %arg0, %c0_i32, %c0_i32_0 : i32, i32, i32
  }
}

</mosaic_0001>

<bundles_post_ra>
// kernel: tpu_custom_call.1
= control target key start
LH: loop header
LB: loop body
LE: loop exit
PB: predicated region body
PF: predicated region fallthrough
CT: control target
= control target key end

     0   :  { %10 = vsyncpa [#allocation3], 0  ;;  %s1176_s0 = inlined_call_operand.hbm [shape: f32[2,4,256], index: 0, kind: input, shape index: {}]   ;;  %s1177_s1 = inlined_call_operand.hbm [shape: f32[4,256], index: 1, kind: input, shape index: {}]   ;;  %s1178_s2 = inlined_call_operand.vmem [shape: f32[2,4,1], index: 2, kind: output, shape index: {0}]   ;;  %s1179_s3 = inlined_call_operand.hbm [shape: f32[2,4,16], index: 3, kind: output, shape index: {1}]   ;;  %s1180_s4 = inlined_call_operand.hbm [shape: f32[2,4,16], index: 4, kind: output, shape index: {2}]  }
   0x1   :  { %12 = vsyncpa [#allocation3 + $0x1], 0 }
   0x2   :  { %13 = vsyncpa [#allocation6], 0 }
   0x3   :  { %14 = vsyncpa [#allocation4], 0 }
   0x4   :  { %16 = vsyncpa [#allocation4 + $0x1], 0 }
   0x5   :  { %17 = vsyncpa [#allocation9], 0 }
   0x6   :  { %19 = vsyncpa [#allocation9 + $0x1], 0  ;;  %s895_s15 = smov 0   ;;  %s897_s16 = smov 0  }
   0x7   :  { %s899_s17 = smov 0   ;;  %s901_s18 = smov 0  }
   0x8 LB: > { %s916_s19 = sadd.s32 4294967295, %s857_s18   ;;  %s608_s20 = sadd.s32 4294967294, %s857_s18   ;;  %s857_s18 = sphi %s901_s18, %s1204_s18   ;;  %s853_s17 = sphi %s899_s17, %s1203_s17   ;;  %s849_s16 = sphi %s897_s16, %s1202_s16   ;;  %s845_s15 = sphi %s895_s15, %s1201_s15  }
   0x9   : > { %p45_p0 = scmp.ne.s32.totalorder %s849_s16, %s845_s15  ;;  %p1181_p1 = scmp.eq.s32.totalorder %s916_s19, 0 }
   0xa   : > { %p122_p3 = scmp.eq.s32.totalorder %s608_s20, 1  ;;  %p609_p5 = scmp.ge.s32.totalorder %s857_s18, 1 }
   0xb   : > { %p925_p4 = por %p1181_p1, %p45_p0  ;;  %p155_p7 = scmp.lt.s32.totalorder %s857_s18, 3 }
   0xc   : > { %p930_p6 = por %p122_p3, %p45_p0  ;;  %s859_s24 = smov [#allocation5]  }
   0xd   : > { %s1184_s21 = scalar_select %p925_p4, 1, 0 }
   0xe   : > { %s1185_s22 = scalar_select %p930_p6, 1, 0 }
   0xf   : > { %p935_p8 = pnand %p609_p5, %p155_p7  ;;  %s168_s25 = sshll.u32 %s859_s24, 4  ;;  %s169_s25 = int_to_ptr.vmem [resolvable:$true] %s168_s25 }
  0x10   : > { %s943_s26 = sadd.s32 1, %s857_s18   ;;  %s32_s30 = sadd.s32 1, %s853_s17 }
  0x11   : > { %s1186_s23 = scalar_select %p935_p8, 1, 0 }
  0x12   : > { %p638_p10 = pneg %p935_p8  ;;  %s29_s28 = ssub.s32 %s857_s18, %s943_s26 }
  0x13   : > { %p953_p12 = scmp.eq.s32.totalorder %s29_s28, 0  ;;  %s697_s7 = scalar_lea.hbm %s1177_s1, 128 }
  0x14   : > { %p947_p11 = pnand %p638_p10, %p1181_p1  ;;  %p698_p0 = scmp.ne.s32.totalorder %s1177_s1, %s697_s7 }
  0x15   : > { %s1188_s29 = scalar_select %p953_p12, 1, 0 }
  0x16   : > { %p699_p3 = pneg %p947_p11  ;;  %p704_p10 = scmp.lt.u32.totalorder %s697_s7, %s1177_s1 }
  0x18   : > { %p700_p5 = pnand %p699_p3, %p698_p0 }
  0x1a   : > { %p701_p7 = pneg %p700_p5 }
  0x1c   : > { %p706_p9 = pnand %p704_p10, %p701_p7 }
  0x1e   : > { %709 = shalt.err (!%p706_p9)
}
  0x1f   : > { %s710_s12 = scalar_lea.vmem %s169_s25, 128  ;;  %p718_p6 = scmp.lt.s32.totalorder %s169_s25, %s169_s25 }
  0x20   : > { %p711_p1 = scmp.ne.s32.totalorder %s169_s25, %s710_s12  ;;  %p719_p4 = scmp.lt.s32.totalorder %s710_s12, %s710_s12 }
  0x22   : > { %p713_p2 = pnand %p711_p1, %p699_p3  ;;  %p720_p8 = por %p719_p4, %p718_p6 }
  0x24   : > { %p714_p13 = pneg %p713_p2 }
  0x26   : > { %p721_p12 = pnand %p720_p8, %p714_p13 }
  0x28   : > { %724 = shalt.err (!%p721_p12)
}
  0x29   : > { %641 = dma.hbm_to_vmem [thread:$0]  (!%p947_p11), %s1177_s1, 128, %s169_s25, [#allocation6]  }
  0x2a   : > { %p1189_p1 = scmp.ne.s32.totalorder %s1188_s29, 0  ;;  %p40_p2 = scmp.eq.s32.totalorder %s857_s18, 0 }
  0x2b   : > { %p1190_p4 = scmp.ne.s32.totalorder %s853_s17, %s849_s16  ;;  %p1191_p6 = scmp.eq.s32.totalorder %s916_s19, 1 }
  0x2c   : > { %s979_s20 = scalar_select %p1189_p1, %s853_s17, %s32_s30  }
  0x2d   : > { %p987_p8 = por %p1191_p6, %p1190_p4  ;;  %p654_p9 = scmp.lt.s32.totalorder %s857_s18, 2 }
  0x2e   : > { %s179_s27 = sand.u32 1, %s853_s17   ;;  %p1193_p12 = pmov %p1190_p4 }
  0x2f   : > { %s612_s28 = sshll.u32 %s179_s27, 3  ;;  %s627_s5 = sshll.u32 %s857_s18, 7 }
  0x30   : > { %p41_p13 = por %p40_p2, %p1193_p12  ;;  %s1000_s25 = scalar_lea.hbm %s1176_s0, %s627_s5 }
  0x31   : > { %s183_s29 = scalar_lea.vmem [#allocation2], %s612_s28  ;;  %s180_s9 = scalar_lea.sflag [#allocation3], %s179_s27 }
  0x32   : > { %s191_s30 = sshll.u32 %s183_s29, 4  ;;  %p1002_p11 = pnand %p654_p9, %p41_p13  ;;  %s1006_s30 = int_to_ptr.vmem [resolvable:$true] %s191_s30 }
  0x33   : > { %s725_s10 = scalar_lea.hbm %s1000_s25, 128  ;;  %s730_s13 = scalar_lea.hbm %s1176_s0, 256 }
  0x34   : > { %p726_p0 = scmp.ne.s32.totalorder %s1000_s25, %s725_s10  ;;  %p727_p3 = pneg %p1002_p11 }
  0x35   : > { %p731_p10 = scmp.lt.u32.totalorder %s1000_s25, %s1176_s0  ;;  %p732_p1 = scmp.lt.u32.totalorder %s730_s13, %s725_s10 }
  0x36   : > { %p728_p5 = pnand %p727_p3, %p726_p0  ;;  %p734_p4 = scmp.lt.u32.totalorder %s725_s10, %s1000_s25 }
  0x37   : > { %p733_p2 = por %p732_p1, %p731_p10 }
  0x38   : > { %p729_p7 = pneg %p728_p5 }
  0x39   : > { %p735_p6 = por %p734_p4, %p733_p2 }
  0x3b   : > { %p736_p9 = pnand %p735_p6, %p729_p7 }
  0x3d   : > { %739 = shalt.err (!%p736_p9)
}
  0x3e   : > { %s740_s27 = scalar_lea.vmem %s1006_s30, 128  ;;  %s860_s5 = smov [#allocation2]  }
  0x3f   : > { %p741_p12 = scmp.ne.s32.totalorder %s1006_s30, %s740_s27  ;;  %s745_s6 = sshll.u32 %s860_s5, 4  ;;  %s746_s6 = int_to_ptr.vmem [resolvable:$false] %s745_s6 }
  0x40   : > { %s747_s7 = scalar_lea.vmem %s746_s6, 256  ;;  %p748_p5 = scmp.lt.s32.totalorder %s1006_s30, %s746_s6 }
  0x41   : > { %p743_p13 = pnand %p741_p12, %p727_p3  ;;  %p749_p10 = scmp.lt.s32.totalorder %s747_s7, %s740_s27 }
  0x43   : > { %p744_p0 = pneg %p743_p13  ;;  %p750_p1 = por %p749_p10, %p748_p5 }
  0x45   : > { %p751_p2 = pnand %p750_p1, %p744_p0 }
  0x47   : > { %754 = shalt.err (!%p751_p2)
}
  0x48   : > { %645 = dma.hbm_to_vmem [thread:$0]  (!%p1002_p11), %s1000_s25, 128, %s1006_s30, %s180_s9  }
  0x49   : > { %p1195_p7 = scmp.ne.s32.totalorder %s1186_s23, 0 }
  0x4a   : > { %s1036_s29 = sand.u32 (!%p1195_p7), 1, %s849_s16   ;;  %p1196_p3 = scmp.ne.s32.totalorder (!%p1195_p7), %s1184_s21, 0 }
  0x4b   : > { %200 = sbr.rel (%p1195_p7) target bundleno = 524 (0x20c), region = 28  ;;  %s616_s10 = sshll.u32 (!%p1195_p7), %s1036_s29, 3 }
  0x4c   : > { %s203_s11 = scalar_lea.sflag (!%p1195_p7), [#allocation3], %s1036_s29  ;;  %s206_s12 = scalar_lea.vmem (!%p1195_p7), [#allocation2], %s616_s10 }
  0x52   : > { %828 = dma.done.wait (%p1196_p3), %s203_s11, 128  }
  0x53   : > { %830 = vsyncadd (%p1196_p3), %s203_s11, 4294967168  ;;  %p1197_p4 = scmp.eq.s32.totalorder %s916_s19, 0 }
  0x55   : > { %832 = dma.done.wait (%p1197_p4), [#allocation6], 128   ;;  %p1198_p11 = pmov %p1197_p4 }
  0x56   : > { %v248_v0 = vld [vmem:[#allocation5] sm:$0xff]  ;;  %v249_v1 = vld [vmem:[%s206_s12] sm:$0xff]  ;;  %s861_s23 = smov 80   ;;  %s862_s25 = smov 112   ;;  %vm306_vm0 = vcmask 125952   ;;  %v251_v57 = vlaneseq }
  0x57   : > { %834 = vsyncadd (%p1198_p11), [#allocation6], 4294967168  ;;  %v250_v2 = vmul.f32 %v249_v1, %v248_v0  ;;  %s863_s30 = smov 64   ;;  %s864_s8 = smov 96  }
  0x58   : > { %s865_s9 = smov 32   ;;  %s866_s21 = smov 48   ;;  %v1072_v58 = vand.u32 127, %v251_v57 }
  0x59   : > { %262 = vrot.lane.b32.xlu1 %v250_v2, %s861_s23  ;;  %254 = vrot.lane.b32.xlu0 %v250_v2, %s862_s25  ;;  %s867_s13 = smov 16   ;;  %v355_v3 = vcombine.high %v250_v2, %v250_v2  ;;  %v307_v5 = vsel %vm306_vm0, %v250_v2, 0.0  ;;  %v282_v25 = vrot.slane %v250_v2, 4  ;;  %s618_s14 = sshll.u32 %s1036_s29, 2 }
  0x5a   : > { %s1061_s28 = scalar_lea.vmem [#allocation8], %s618_s14  ;;  %vm310_vm1 = vcmp.eq.s32.totalorder %v1072_v58, 0  ;;  %vm316_vm2 = vcmp.eq.s32.totalorder %v1072_v58, 1  ;;  %vm322_vm3 = vcmp.eq.s32.totalorder %v1072_v58, 2  ;;  %vm328_vm4 = vcmp.eq.s32.totalorder %v1072_v58, 3  ;;  %s623_s27 = sshll.u32 %s916_s19, 6 }
  0x5b   : > { %v357_v4 = vsel %vm306_vm0, %v355_v3, 0.0  ;;  %vm334_vm5 = vcmp.eq.s32.totalorder %v1072_v58, 4  ;;  %vm340_vm6 = vcmp.eq.s32.totalorder %v1072_v58, 5  ;;  %vm346_vm7 = vcmp.eq.s32.totalorder %v1072_v58, 6  ;;  %s1091_s7 = scalar_lea.hbm %s1180_s4, %s623_s27  ;;  %s472_s10 = sshll.u32 %s1061_s28, 4  ;;  %s473_s10 = int_to_ptr.vmem [resolvable:$true] %s472_s10 }
  0x5c   : > { %vm352_vm8 = vcmp.eq.s32.totalorder %v1072_v58, 7  ;;  %vm360_vm9 = vcmp.eq.s32.totalorder %v1072_v58, 8  ;;  %s443_s11 = scalar_lea.sflag [#allocation9], %s1036_s29  ;;  %s755_s12 = scalar_lea.vmem %s473_s10, 64 }
  0x5d   : > { %266 = vrot.lane.b32.xlu1 %v250_v2, %s863_s30  ;;  %258 = vrot.lane.b32.xlu0 %v250_v2, %s864_s8  ;;  %p756_p6 = scmp.ne.s32.totalorder %s473_s10, %s755_s12 }
  0x5f   : > { %p757_p9 = pnand %p756_p6, %p987_p8 }
  0x61   : > { %274 = vrot.lane.b32.xlu1 %v250_v2, %s865_s9  ;;  %270 = vrot.lane.b32.xlu0 %v250_v2, %s866_s21  ;;  %p758_p12 = pneg %p757_p9 }
  0x65   : > { %278 = vrot.lane.b32.xlu0 %v250_v2, %s867_s13 }
  0x84   : > { %358 = vadd.xlane.f32.xlu0 %v357_v4 }
  0x85   : > { %308 = vadd.xlane.f32.xlu1 %v307_v5 }
  0x96   : > { %363 = vrot.lane.b32.xlu1 %v355_v3, %s862_s25 }
  0x9a   : > { %372 = vrot.lane.b32.xlu0 %v355_v3, %s864_s8 }
  0x9e   : > { %381 = vrot.lane.b32.xlu0 %v355_v3, %s861_s23  ;;  %s868_s23 = smov [#allocation8]  }
  0x9f   : > { %s759_s25 = sshll.u32 %s868_s23, 4  ;;  %s760_s25 = int_to_ptr.vmem [resolvable:$false] %s759_s25 }
  0xa0   : > { %p762_p13 = scmp.lt.s32.totalorder %s473_s10, %s760_s25 }
  0xa2   : > { %390 = vrot.lane.b32.xlu0 %v355_v3, %s863_s30  ;;  %s761_s30 = scalar_lea.vmem %s760_s25, 128 }
  0xa3   : > { %p763_p0 = scmp.lt.s32.totalorder %s761_s30, %s755_s12 }
  0xa5   : > { %p764_p5 = por %p763_p0, %p762_p13 }
  0xa6   : > { %399 = vrot.lane.b32.xlu0 %v355_v3, %s866_s21 }
  0xa7   : > { %p765_p10 = pnand %p764_p5, %p758_p12 }
  0xaa   : > { %408 = vrot.lane.b32.xlu0 %v355_v3, %s865_s9 }
  0xcb   : > { %v255_v6 = vpop.permute.xlu0 %254  ;;  %v263_v7 = vpop.permute.xlu1 %262 }
  0xcc   : > { %v313_v8 = vsel %vm306_vm0, %v255_v6, 0.0  ;;  %v325_v9 = vsel %vm306_vm0, %v263_v7, 0.0  ;;  %v257_v10 = vadd.f32 %v255_v6, %v250_v2  ;;  %v285_v28 = vrot.slane %v255_v6, 4 }
  0xcd   : > { %314 = vadd.xlane.f32.xlu0 %v313_v8  ;;  %326 = vadd.xlane.f32.xlu1 %v325_v9  ;;  %v291_v32 = vrot.slane %v263_v7, 4 }
  0xcf   : > { %v259_v11 = vpop.permute.xlu0 %258  ;;  %v267_v12 = vpop.permute.xlu1 %266 }
  0xd0   : > { %v261_v13 = vadd.f32 %v259_v11, %v257_v10  ;;  %v319_v14 = vsel %vm306_vm0, %v259_v11, 0.0  ;;  %v331_v16 = vsel %vm306_vm0, %v267_v12, 0.0  ;;  %v288_v30 = vrot.slane %v259_v11, 4 }
  0xd1   : > { %320 = vadd.xlane.f32.xlu0 %v319_v14  ;;  %v294_v34 = vrot.slane %v267_v12, 4 }
  0xd2   : > { %v265_v15 = vadd.f32 %v263_v7, %v261_v13 }
  0xd3   : > { %v271_v17 = vpop.permute.xlu0 %270  ;;  %v275_v18 = vpop.permute.xlu1 %274 }
  0xd4   : > { %v269_v19 = vadd.f32 %v267_v12, %v265_v15  ;;  %v337_v20 = vsel %vm306_vm0, %v271_v17, 0.0  ;;  %v343_v22 = vsel %vm306_vm0, %v275_v18, 0.0  ;;  %v297_v36 = vrot.slane %v271_v17, 4 }
  0xd5   : > { %332 = vadd.xlane.f32.xlu0 %v331_v16  ;;  %338 = vadd.xlane.f32.xlu1 %v337_v20  ;;  %v300_v38 = vrot.slane %v275_v18, 4 }
  0xd6   : > { %v273_v21 = vadd.f32 %v271_v17, %v269_v19 }
  0xd7   : > { %v279_v23 = vpop.permute.xlu0 %278 }
  0xd8   : > { %v277_v24 = vadd.f32 %v275_v18, %v273_v21  ;;  %v349_v26 = vsel %vm306_vm0, %v279_v23, 0.0  ;;  %v303_v40 = vrot.slane %v279_v23, 4 }
  0xd9   : > { %344 = vadd.xlane.f32.xlu0 %v343_v22  ;;  %350 = vadd.xlane.f32.xlu1 %v349_v26 }
  0xda   : > { %v281_v27 = vadd.f32 %v279_v23, %v277_v24 }
  0xdc   : > { %v284_v29 = vadd.f32 %v282_v25, %v281_v27 }
  0xde   : > { %v287_v31 = vadd.f32 %v285_v28, %v284_v29 }
  0xe0   : > { %v290_v33 = vadd.f32 %v288_v30, %v287_v31 }
  0xe2   : > { %v293_v35 = vadd.f32 %v291_v32, %v290_v33 }
  0xe4   : > { %v296_v37 = vadd.f32 %v294_v34, %v293_v35 }
  0xe6   : > { %v299_v39 = vadd.f32 %v297_v36, %v296_v37 }
  0xe8   : > { %v302_v41 = vadd.f32 %v300_v38, %v299_v39 }
  0xea   : > { %v305_v42 = vadd.f32 %v303_v40, %v302_v41 }
  0xec   : > { %430 = vst.msk [vmem:[%s1061_s28] sm:$0xf] %vm306_vm0, %v305_v42  ;;  %v426_v21 = vsel %vm306_vm0, %v305_v42, 0.0 }
  0xef   : > { %417 = vrot.lane.b32.xlu0 %v355_v3, %s867_s13 }
 0x111   : > { %v359_v43 = vpop.xlane.xlu0 %358 }
 0x112   : > { %v309_v44 = vpop.xlane.xlu1 %308  ;;  %v361_v18 = vsel %vm360_vm9, %v359_v43, 0.0 }
 0x113   : > { %v311_v59 = vsel %vm310_vm1, %v309_v44, 0.0 }
 0x115   : > { %v373_v45 = vpop.permute.xlu0 %372 }
 0x116   : > { %v364_v46 = vpop.permute.xlu1 %363  ;;  %v375_v47 = vsel %vm306_vm0, %v373_v45, 0.0 }
 0x117   : > { %376 = vadd.xlane.f32.xlu1 %v375_v47  ;;  %v366_v48 = vsel %vm306_vm0, %v364_v46, 0.0 }
 0x118   : > { %367 = vadd.xlane.f32.xlu0 %v366_v48 }
 0x119   : > { %v382_v49 = vpop.permute.xlu0 %381 }
 0x11a   : > { %v384_v50 = vsel %vm306_vm0, %v382_v49, 0.0 }
 0x11c   : > { %385 = vadd.xlane.f32.xlu0 %v384_v50 }
 0x11d   : > { %v391_v51 = vpop.permute.xlu0 %390 }
 0x11e   : > { %v393_v52 = vsel %vm306_vm0, %v391_v51, 0.0 }
 0x11f   : > { %394 = vadd.xlane.f32.xlu1 %v393_v52 }
 0x121   : > { %v400_v53 = vpop.permute.xlu0 %399 }
 0x122   : > { %v402_v54 = vsel %vm306_vm0, %v400_v53, 0.0 }
 0x123   : > { %403 = vadd.xlane.f32.xlu1 %v402_v54 }
 0x125   : > { %v409_v55 = vpop.permute.xlu0 %408 }
 0x126   : > { %v411_v56 = vsel %vm306_vm0, %v409_v55, 0.0 }
 0x127   : > { %412 = vadd.xlane.f32.xlu1 %v411_v56 }
 0x15a   : > { %v315_v60 = vpop.xlane.xlu0 %314  ;;  %v327_v0 = vpop.xlane.xlu1 %326 }
 0x15b   : > { %v317_v61 = vsel %vm316_vm2, %v315_v60, 0.0  ;;  %v329_v3 = vsel %vm328_vm4, %v327_v0, 0.0 }
 0x15c   : > { %v318_v62 = vadd.f32 %v317_v61, %v311_v59 }
 0x15e   : > { %v321_v63 = vpop.xlane.xlu0 %320 }
 0x15f   : > { %v323_v1 = vsel %vm322_vm3, %v321_v63, 0.0 }
 0x160   : > { %v324_v2 = vadd.f32 %v323_v1, %v318_v62 }
 0x162   : > { %v330_v4 = vadd.f32 %v329_v3, %v324_v2  ;;  %v333_v5 = vpop.xlane.xlu0 %332  ;;  %v339_v6 = vpop.xlane.xlu1 %338 }
 0x163   : > { %v335_v7 = vsel %vm334_vm5, %v333_v5, 0.0  ;;  %v341_v8 = vsel %vm340_vm6, %v339_v6, 0.0 }
 0x164   : > { %v336_v9 = vadd.f32 %v335_v7, %v330_v4 }
 0x166   : > { %v342_v10 = vadd.f32 %v341_v8, %v336_v9  ;;  %v345_v11 = vpop.xlane.xlu0 %344  ;;  %v351_v12 = vpop.xlane.xlu1 %350 }
 0x167   : > { %v347_v13 = vsel %vm346_vm7, %v345_v11, 0.0  ;;  %v353_v14 = vsel %vm352_vm8, %v351_v12, 0.0 }
 0x168   : > { %v348_v15 = vadd.f32 %v347_v13, %v342_v10 }
 0x16a   : > { %v354_v16 = vadd.f32 %v353_v14, %v348_v15  ;;  %v418_v17 = vpop.permute.xlu0 %417 }
 0x16b   : > { %v420_v19 = vsel %vm306_vm0, %v418_v17, 0.0 }
 0x16c   : > { %421 = vadd.xlane.f32.xlu1 %v420_v19  ;;  %v362_v20 = vadd.f32 %v361_v18, %v354_v16 }
 0x170   : > { %427 = vadd.xlane.f32.xlu1 %v426_v21 }
 0x171   : > { %768 = shalt.err (!%p765_p10)
}
 0x172   : > { %s769_s8 = scalar_lea.hbm %s1091_s7, 64  ;;  %s773_s13 = scalar_lea.hbm %s1180_s4, 128 }
 0x173   : > { %p770_p1 = scmp.ne.s32.totalorder %s1091_s7, %s769_s8  ;;  %p774_p3 = scmp.lt.u32.totalorder %s1091_s7, %s1180_s4 }
 0x174   : > { %p775_p4 = scmp.lt.u32.totalorder %s773_s13, %s769_s8  ;;  %p777_p6 = scmp.lt.u32.totalorder %s769_s8, %s1091_s7 }
 0x175   : > { %p771_p2 = pnand %p770_p1, %p987_p8 }
 0x176   : > { %p776_p11 = por %p775_p4, %p774_p3 }
 0x177   : > { %p772_p7 = pneg %p771_p2 }
 0x178   : > { %p778_p9 = por %p777_p6, %p776_p11 }
 0x17a   : > { %p779_p12 = pnand %p778_p9, %p772_p7 }
 0x17c   : > { %782 = shalt.err (!%p779_p12)
}
 0x17d   : > { %635 = dma.vmem_to_hbm [thread:$0]  (%p987_p8), %s473_s10, 64, %s1091_s7, %s443_s11   ;;  %vm369_vm10 = vcmp.eq.s32.totalorder %v1072_v58, 9  ;;  %vm378_vm11 = vcmp.eq.s32.totalorder %v1072_v58, 10  ;;  %vm387_vm12 = vcmp.eq.s32.totalorder %v1072_v58, 11  ;;  %vm396_vm13 = vcmp.eq.s32.totalorder %v1072_v58, 12 }
 0x17e   : > { %p244_p13 = scmp.lt.s32.totalorder %s916_s19, 1  ;;  %vm405_vm14 = vcmp.eq.s32.totalorder %v1072_v58, 13  ;;  %vm414_vm15 = vcmp.eq.s32.totalorder %v1072_v58, 14  ;;  %vm423_vm1 = vcmp.eq.s32.totalorder %v1072_v58, 15  ;;  %s236_s10 = scalar_lea.vmem [#allocation7], %s618_s14  ;;  %vm431_vm2 = vcmask 3072  }
 0x17f   : > { %s459_s11 = sshll.u32 %s236_s10, 4  ;;  %s1131_s9 = scalar_lea.hbm %s1179_s3, %s623_s27  ;;  %s1133_s11 = int_to_ptr.vmem [resolvable:$true] %s459_s11 }
 0x180   : > { %s245_s6 = scalar_select %p244_p13, %s916_s19, 1 }
 0x181   : > { %s438_s14 = scalar_lea.sflag [#allocation4], %s1036_s29  ;;  %s783_s21 = scalar_lea.vmem %s1133_s11, 64 }
 0x182   : > { %s620_s7 = sshll.u32 %s245_s6, 2  ;;  %p784_p0 = scmp.ne.s32.totalorder %s1133_s11, %s783_s21 }
 0x183   : > { %s247_s25 = scalar_lea.vmem %s1178_s2, %s620_s7  ;;  %s869_s19 = smov [#allocation7]  }
 0x184   : > { %p785_p5 = pnand %p784_p0, %p987_p8  ;;  %s787_s13 = sshll.u32 %s869_s19, 4  ;;  %s788_s13 = int_to_ptr.vmem [resolvable:$false] %s787_s13 }
 0x185   : > { %s789_s27 = scalar_lea.vmem %s788_s13, 128  ;;  %p790_p1 = scmp.lt.s32.totalorder %s1133_s11, %s788_s13 }
 0x186   : > { %p786_p10 = pneg %p785_p5  ;;  %p791_p2 = scmp.lt.s32.totalorder %s789_s27, %s783_s21 }
 0x188   : > { %p792_p7 = por %p791_p2, %p790_p1 }
 0x18a   : > { %p793_p3 = pnand %p792_p7, %p786_p10 }
 0x1a4   : > { %v377_v22 = vpop.xlane.xlu1 %376 }
 0x1a5   : > { %v368_v23 = vpop.xlane.xlu0 %367  ;;  %v379_v28 = vsel %vm378_vm11, %v377_v22, 0.0 }
 0x1a6   : > { %v370_v24 = vsel %vm369_vm10, %v368_v23, 0.0 }
 0x1a7   : > { %v371_v26 = vadd.f32 %v370_v24, %v362_v20 }
 0x1a9   : > { %v386_v27 = vpop.xlane.xlu0 %385  ;;  %v380_v29 = vadd.f32 %v379_v28, %v371_v26 }
 0x1aa   : > { %v388_v31 = vsel %vm387_vm12, %v386_v27, 0.0 }
 0x1ab   : > { %v389_v32 = vadd.f32 %v388_v31, %v380_v29 }
 0x1ac   : > { %v395_v25 = vpop.xlane.xlu1 %394 }
 0x1ad   : > { %v397_v33 = vsel %vm396_vm13, %v395_v25, 0.0 }
 0x1ae   : > { %v398_v36 = vadd.f32 %v397_v33, %v389_v32 }
 0x1b0   : > { %v404_v30 = vpop.xlane.xlu1 %403 }
 0x1b1   : > { %v406_v35 = vsel %vm405_vm14, %v404_v30, 0.0 }
 0x1b2   : > { %v407_v38 = vadd.f32 %v406_v35, %v398_v36 }
 0x1b4   : > { %v413_v34 = vpop.xlane.xlu1 %412 }
 0x1b5   : > { %v415_v37 = vsel %vm414_vm15, %v413_v34, 0.0 }
 0x1b6   : > { %v416_v39 = vadd.f32 %v415_v37, %v407_v38 }
 0x1f9   : > { %v422_v40 = vpop.xlane.xlu1 %421 }
 0x1fa   : > { %v424_v41 = vsel %vm423_vm1, %v422_v40, 0.0 }
 0x1fb   : > { %v425_v42 = vadd.f32 %v424_v41, %v416_v39 }
 0x1fd   : > { %v428_v43 = vpop.xlane.xlu1 %427  ;;  %429 = vst.msk [vmem:[%s236_s10] sm:$0xf] %vm306_vm0, %v425_v42 }
 0x1fe   : > { %432 = vst.msk [vmem:[%s247_s25] sm:$0xf] %vm431_vm2, %v428_v43 }
 0x1ff   : > { %796 = shalt.err (!%p793_p3)
}
 0x200   : > { %s797_s29 = scalar_lea.hbm %s1131_s9, 64  ;;  %s801_s6 = scalar_lea.hbm %s1179_s3, 128 }
 0x201   : > { %p798_p4 = scmp.ne.s32.totalorder %s1131_s9, %s797_s29  ;;  %p802_p9 = scmp.lt.u32.totalorder %s1131_s9, %s1179_s3 }
 0x202   : > { %p803_p12 = scmp.lt.u32.totalorder %s801_s6, %s797_s29  ;;  %p805_p0 = scmp.lt.u32.totalorder %s797_s29, %s1131_s9 }
 0x203   : > { %p799_p11 = pnand %p798_p4, %p987_p8 }
 0x204   : > { %p804_p13 = por %p803_p12, %p802_p9 }
 0x205   : > { %p800_p6 = pneg %p799_p11 }
 0x206   : > { %p806_p5 = por %p805_p0, %p804_p13 }
 0x208   : > { %p807_p10 = pnand %p806_p5, %p800_p6 }
 0x20a   : > { %810 = shalt.err (!%p807_p10)
}
 0x20b   : > { %634 = dma.vmem_to_hbm [thread:$0]  (%p987_p8), %s1133_s11, 64, %s1131_s9, %s438_s14  }
 0x20c PF: > { %s491_s12 = sand.u32 1, %s845_s15   ;;  %p1199_p1 = scmp.ne.s32.totalorder %s1185_s22, 0 }
 0x20d   : > { %p1200_p2 = scmp.ge.s32.totalorder %s857_s18, 2  ;;  %s492_s23 = scalar_lea.sflag [#allocation4], %s491_s12 }
 0x20f   : > { %p647_p7 = pnand %p1200_p2, %p1199_p1 }
 0x211   : > { %836 = dma.done.wait (!%p647_p7), %s492_s23, 64  }
 0x212   : > { %838 = vsyncadd (!%p647_p7), %s492_s23, 4294967232  ;;  %s501_s25 = scalar_lea.sflag [#allocation9], %s491_s12 }
 0x213   : > { %840 = dma.done.wait (!%p647_p7), %s501_s25, 64  }
 0x214   : > { %842 = vsyncadd (!%p647_p7), %s501_s25, 4294967232  ;;  %p22_p8 = scmp.ge.s32.totalorder %s943_s26, 4   ;;  %s1201_s15 = smov %s849_s16 }
 0x215   : > { %s1202_s16 = smov %s853_s17  ;;  %s1203_s17 = smov %s979_s20 }
 0x216   : > { %s1204_s18 = smov %s943_s26  ;;  %24 = sbr.rel (!%p22_p8) target bundleno = 8 (0x8), region = 106 }
 0x21d   :  { %506 = vsyncpa [#allocation3], 1 }
 0x21e   :  { %508 = vsyncpa [#allocation3 + $0x1], 1 }
 0x21f   :  { %509 = vsyncpa [#allocation6], 1 }
 0x220   :  { %510 = vsyncpa [#allocation4], 1 }
 0x221   :  { %512 = vsyncpa [#allocation4 + $0x1], 1 }
 0x222   :  { %513 = vsyncpa [#allocation9], 1 }
 0x223   :  { %515 = vsyncpa [#allocation9 + $0x1], 1 }

</bundles_post_ra>
